<compile_context>
chip_gen: v7x
topology: tpu7x:2x2x1
jax: 0.10.0
libtpu: 0.0.40
codegen_flags: <defaults>
</compile_context>

<pallas_src>
import jax
import jax.numpy as jnp
from jax.experimental import pallas as pl
from jax.experimental.pallas import tpu as pltpu

INPUT_DIM = 14
HIDDEN_DIM = 256
OUT_DIM = 2
OUT_PAD = 128          # padded output width for the 2nd MXU matmul (VMEM only)
MAX_TB = 8192          # batch-tile rows; ~13 MiB peak VMEM, safe on all gens


def mlp_kernel(x_ref, w1_ref, b1_ref, w2_ref, b2_ref, o_ref):
    # hidden = relu(x @ W1 + b1)   -- MXU matmul, VPU add/relu (free filler)
    h = jnp.dot(x_ref[...], w1_ref[...], preferred_element_type=jnp.float32)
    h = jnp.maximum(h + b1_ref[...], 0.0)                # (tb, H) + (1, H)
    # Padded matmul stays in VMEM; only the first OUT_DIM columns are real.
    out = jnp.dot(h, w2_ref[...], preferred_element_type=jnp.float32)  # (tb, 128)
    # Store only the real logits -> (tb, 2) HBM write (64x less than padded).
    o_ref[...] = (out[:, :OUT_DIM] + b2_ref[...]).astype(o_ref.dtype)


def prepare_params(w1, b1, w2, b2):
    """One-time parameter preprocessing (PyTorch layout -> kernel layout).

    w1: (HIDDEN_DIM, INPUT_DIM), b1: (HIDDEN_DIM,)
    w2: (OUT_DIM, HIDDEN_DIM),   b2: (OUT_DIM,)
    Returns kernel-ready tensors:
      w1_t  (INPUT_DIM, HIDDEN_DIM)
      b1_2d (1, HIDDEN_DIM)
      w2_p  (HIDDEN_DIM, OUT_PAD)  -- W2.T zero-padded to 128 output columns
      b2_2d (1, OUT_DIM)
    """
    w1_t = jnp.transpose(w1).astype(jnp.float32)               # (14, 256)
    b1_2d = b1.reshape(1, HIDDEN_DIM).astype(jnp.float32)      # (1, 256)
    w2_p = jnp.zeros((HIDDEN_DIM, OUT_PAD), jnp.float32)
    w2_p = w2_p.at[:, :OUT_DIM].set(jnp.transpose(w2).astype(jnp.float32))
    b2_2d = b2.reshape(1, OUT_DIM).astype(jnp.float32)         # (1, 2)
    return w1_t, b1_2d, w2_p, b2_2d


def binary_classification_forward(x, params):
    """Forward pass. x: (B, INPUT_DIM) f32; params from prepare_params()."""
    w1_t, b1_2d, w2_p, b2_2d = params
    B = x.shape[0]
    # Batch tile: multiple of 8 sublanes, capped at MAX_TB rows.
    tb = min(MAX_TB, pl.cdiv(B, 8) * 8)
    grid = (pl.cdiv(B, tb),)

    # Constant-index params only need a single VMEM buffer.
    const = dict(pipeline_mode=pl.Buffered(1))

    return pl.pallas_call(
        mlp_kernel,
        out_shape=jax.ShapeDtypeStruct((B, OUT_DIM), jnp.float32),
        grid=grid,
        in_specs=[
            pl.BlockSpec((tb, INPUT_DIM), lambda i: (i, 0)),                 # x tile
            pl.BlockSpec((INPUT_DIM, HIDDEN_DIM), lambda i: (0, 0), **const),  # W1
            pl.BlockSpec((1, HIDDEN_DIM), lambda i: (0, 0), **const),          # b1
            pl.BlockSpec((HIDDEN_DIM, OUT_PAD), lambda i: (0, 0), **const),    # W2 pad
            pl.BlockSpec((1, OUT_DIM), lambda i: (0, 0), **const),             # b2
        ],
        out_specs=pl.BlockSpec((tb, OUT_DIM), lambda i: (i, 0)),
        compiler_params=pltpu.CompilerParams(
            # TODO(synk): on v7x, pltpu.CORE_PARALLEL on the batch axis (with a
            # grid of >=2 steps) would split work across the two TensorCores.
            dimension_semantics=("parallel",),
        ),
    )(x, w1_t, b1_2d, w2_p, b2_2d)


def reference_forward(x, w1, b1, w2, b2):
    h = jnp.maximum(x @ w1.T + b1, 0.0)
    return h @ w2.T + b2


if __name__ == "__main__":
    key = jax.random.PRNGKey(0)
    kx, k1, kb1, k2, kb2 = jax.random.split(key, 5)

    B = 8
    x = jax.random.normal(kx, (B, INPUT_DIM), dtype=jnp.float32)

    # Deterministic params in PyTorch nn.Linear layout (uniform init like torch).
    bound1 = 1.0 / (INPUT_DIM ** 0.5)
    w1 = jax.random.uniform(k1, (HIDDEN_DIM, INPUT_DIM), jnp.float32, -bound1, bound1)
    b1 = jax.random.uniform(kb1, (HIDDEN_DIM,), jnp.float32, -bound1, bound1)
    bound2 = 1.0 / (HIDDEN_DIM ** 0.5)
    w2 = jax.random.uniform(k2, (OUT_DIM, HIDDEN_DIM), jnp.float32, -bound2, bound2)
    b2 = jax.random.uniform(kb2, (OUT_DIM,), jnp.float32, -bound2, bound2)

    # One-time layout prep (NOT on the per-call path).
    params = jax.block_until_ready(prepare_params(w1, b1, w2, b2))

    out = binary_classification_forward(x, params)
    out = jax.block_until_ready(out)

    ref = reference_forward(x, w1, b1, w2, b2)
    assert out.shape == (B, OUT_DIM)
    assert jnp.allclose(out, ref, atol=1e-4, rtol=1e-4)
    print("KERNEL_OK")
</pallas_src>

<mosaic_0001>
module attributes {stable_mosaic.version = 11 : i64} {
  func.func @mlp_kernel(%arg0: i32, %arg1: memref<8x14xf32, #tpu.memory_space<vmem>>, %arg2: memref<14x256xf32, #tpu.memory_space<vmem>>, %arg3: memref<1x256xf32, #tpu.memory_space<vmem>>, %arg4: memref<256x128xf32, #tpu.memory_space<vmem>>, %arg5: memref<1x2xf32, #tpu.memory_space<vmem>>, %arg6: memref<8x2xf32, #tpu.memory_space<vmem>>) attributes {dimension_semantics = [#tpu.dimension_semantics<parallel>], iteration_bounds = array<i64: 1>, scalar_prefetch = 0 : i64, scratch_operands = 0 : i64, tpu.core_type = #tpu.core_type<tc>, window_params = [{transform_indices = @transform_0, window_bounds = array<i64: 8, 14>}, {pipeline_mode = #tpu.pipeline_mode<synchronous>, transform_indices = @transform_1, window_bounds = array<i64: 14, 256>}, {pipeline_mode = #tpu.pipeline_mode<synchronous>, transform_indices = @transform_2, window_bounds = array<i64: 1, 256>}, {pipeline_mode = #tpu.pipeline_mode<synchronous>, transform_indices = @transform_3, window_bounds = array<i64: 256, 128>}, {pipeline_mode = #tpu.pipeline_mode<synchronous>, transform_indices = @transform_4, window_bounds = array<i64: 1, 2>}, {transform_indices = @transform_5, window_bounds = array<i64: 8, 2>}]} {
    %c0 = arith.constant 0 : index
    %c0_0 = arith.constant 0 : index
    %0 = vector.load %arg1[%c0, %c0_0] : memref<8x14xf32, #tpu.memory_space<vmem>>, vector<8x14xf32>
    %c0_1 = arith.constant 0 : index
    %c0_2 = arith.constant 0 : index
    %1 = vector.load %arg2[%c0_1, %c0_2] : memref<14x256xf32, #tpu.memory_space<vmem>>, vector<14x256xf32>
    %cst = arith.constant dense<0.000000e+00> : vector<8x256xf32>
    %2 = tpu.matmul %0, %1, %cst {dimension_numbers = #tpu.dot_dimension_numbers<[1], [0], [0], [1], [0, 0, 1, 1], [], []>} : vector<8x14xf32>, vector<14x256xf32>, vector<8x256xf32> -> vector<8x256xf32>
    %c0_3 = arith.constant 0 : index
    %c0_4 = arith.constant 0 : index
    %3 = vector.load %arg3[%c0_3, %c0_4] : memref<1x256xf32, #tpu.memory_space<vmem>>, vector<1x256xf32>
    %4 = vector.broadcast %3 : vector<1x256xf32> to vector<8x256xf32>
    %5 = arith.addf %2, %4 : vector<8x256xf32>
    %cst_5 = arith.constant 0.000000e+00 : f32
    %6 = vector.broadcast %cst_5 : f32 to vector<8x256xf32>
    %7 = arith.maximumf %5, %6 : vector<8x256xf32>
    %c0_6 = arith.constant 0 : index
    %c0_7 = arith.constant 0 : index
    %8 = vector.load %arg4[%c0_6, %c0_7] : memref<256x128xf32, #tpu.memory_space<vmem>>, vector<256x128xf32>
    %cst_8 = arith.constant dense<0.000000e+00> : vector<8x128xf32>
    %9 = tpu.matmul %7, %8, %cst_8 {dimension_numbers = #tpu.dot_dimension_numbers<[1], [0], [0], [1], [0, 0, 1, 1], [], []>} : vector<8x256xf32>, vector<256x128xf32>, vector<8x128xf32> -> vector<8x128xf32>
    %10 = vector.extract_strided_slice %9 {offsets = [0, 0], sizes = [8, 2], strides = [1, 1]} : vector<8x128xf32> to vector<8x2xf32>
    %c0_9 = arith.constant 0 : index
    %c0_10 = arith.constant 0 : index
    %11 = vector.load %arg5[%c0_9, %c0_10] : memref<1x2xf32, #tpu.memory_space<vmem>>, vector<1x2xf32>
    %12 = vector.broadcast %11 : vector<1x2xf32> to vector<8x2xf32>
    %13 = arith.addf %10, %12 : vector<8x2xf32>
    %c0_11 = arith.constant 0 : index
    %c0_12 = arith.constant 0 : index
    %14 = vector.load %arg6[%c0_11, %c0_12] : memref<8x2xf32, #tpu.memory_space<vmem>>, vector<8x2xf32>
    tpu.vector_store %arg6[%c0_11, %c0_12], %13 {strides = array<i32>} : memref<8x2xf32, #tpu.memory_space<vmem>>, vector<8x2xf32>,
    return
  }
  func.func @transform_0(%arg0: i32) -> (i32, i32) {
    %c0_i32 = arith.constant 0 : i32
    %c0_i32_0 = arith.constant 0 : i32
    return %arg0, %c0_i32 : i32, i32
  }
  func.func @transform_1(%arg0: i32) -> (i32, i32) {
    %c0_i32 = arith.constant 0 : i32
    %c0_i32_0 = arith.constant 0 : i32
    %c0_i32_1 = arith.constant 0 : i32
    return %c0_i32, %c0_i32_0 : i32, i32
  }
  func.func @transform_2(%arg0: i32) -> (i32, i32) {
    %c0_i32 = arith.constant 0 : i32
    %c0_i32_0 = arith.constant 0 : i32
    %c0_i32_1 = arith.constant 0 : i32
    return %c0_i32, %c0_i32_0 : i32, i32
  }
  func.func @transform_3(%arg0: i32) -> (i32, i32) {
    %c0_i32 = arith.constant 0 : i32
    %c0_i32_0 = arith.constant 0 : i32
    %c0_i32_1 = arith.constant 0 : i32
    return %c0_i32, %c0_i32_0 : i32, i32
  }
  func.func @transform_4(%arg0: i32) -> (i32, i32) {
    %c0_i32 = arith.constant 0 : i32
    %c0_i32_0 = arith.constant 0 : i32
    %c0_i32_1 = arith.constant 0 : i32
    return %c0_i32, %c0_i32_0 : i32, i32
  }
  func.func @transform_5(%arg0: i32) -> (i32, i32) {
    %c0_i32 = arith.constant 0 : i32
    %c0_i32_0 = arith.constant 0 : i32
    return %arg0, %c0_i32 : i32, i32
  }
}

</mosaic_0001>

<bundles_post_ra>
// kernel: tpu_custom_call.1
= control target key start
LH: loop header
LB: loop body
LE: loop exit
PB: predicated region body
PF: predicated region fallthrough
CT: control target
= control target key end

     0   :  { %10 = vsyncpa [#allocation3], 0  ;;  %s526_s0 = inlined_call_operand.hbm [shape: f32[8,14], index: 0, kind: input, shape index: {}]   ;;  %s527_s1 = inlined_call_operand.hbm [shape: f32[14,256], index: 1, kind: input, shape index: {}]   ;;  %s528_s2 = inlined_call_operand.vmem [shape: f32[1,256], index: 2, kind: input, shape index: {}]   ;;  %s529_s3 = inlined_call_operand.hbm [shape: f32[256,128], index: 3, kind: input, shape index: {}]   ;;  %s530_s4 = inlined_call_operand.vmem [shape: f32[1,2], index: 4, kind: input, shape index: {}]   ;;  %s531_s5 = inlined_call_operand.vmem [shape: f32[8,2], index: 5, kind: output, shape index: {}]  }
   0x1   :  { %11 = vsyncpa [#allocation5], 0  ;;  %s434_s18 = smov [#allocation4]   ;;  %s364_s22 = scalar_lea.hbm %s527_s1, 512 }
   0x2   :  { %s27_s19 = sshll.u32 %s434_s18, 4  ;;  %p365_p0 = scmp.ne.s32.totalorder %s527_s1, %s364_s22  ;;  %s28_s19 = int_to_ptr.vmem [resolvable:$true] %s27_s19 }
   0x3   :  { %p368_p1 = scmp.lt.u32.totalorder %s364_s22, %s527_s1 }
   0x5   :  { %p370_p2 = pnand %p368_p1, %p365_p0 }
   0x7   :  { %373 = shalt.err (!%p370_p2)
}
   0x8   :  { %s374_s27 = scalar_lea.vmem %s28_s19, 512  ;;  %p379_p4 = scmp.lt.s32.totalorder %s28_s19, %s28_s19 }
   0x9   :  { %p375_p3 = scmp.ne.s32.totalorder %s28_s19, %s374_s27  ;;  %p380_p5 = scmp.lt.s32.totalorder %s374_s27, %s374_s27 }
   0xb   :  { %p381_p6 = por %p380_p5, %p379_p4 }
   0xd   :  { %p382_p7 = pnand %p381_p6, %p375_p3 }
   0xf   :  { %385 = shalt.err (!%p382_p7)
}
  0x10   :  { %s435_s28 = smov 256   ;;  %s436_s29 = smov 16  }
  0x11   :  { %33 = dma.hbm_to_vmem [thread:$0]  %s527_s1, 512, %s28_s19, [#allocation5], %s435_s28, %s435_s28, %s436_s29  }
  0x12   :  { %s437_s7 = smov [#allocation2]   ;;  %s438_s9 = smov [#allocation6]  }
  0x13   :  { %s18_s8 = sshll.u32 %s437_s7, 4  ;;  %s41_s10 = sshll.u32 %s438_s9, 4  ;;  %s19_s8 = int_to_ptr.vmem [resolvable:$true] %s18_s8  ;;  %s42_s10 = int_to_ptr.vmem [resolvable:$true] %s41_s10 }
  0x14   :  { %s386_s13 = scalar_lea.hbm %s526_s0, 128 }
  0x15   :  { %p387_p8 = scmp.ne.s32.totalorder %s526_s0, %s386_s13  ;;  %p390_p9 = scmp.lt.u32.totalorder %s386_s13, %s526_s0 }
  0x17   :  { %p392_p10 = pnand %p390_p9, %p387_p8 }
  0x19   :  { %395 = shalt.err (!%p392_p10)
}
  0x1a   :  { %s396_s1 = scalar_lea.vmem %s19_s8, 128  ;;  %p401_p12 = scmp.lt.s32.totalorder %s19_s8, %s19_s8 }
  0x1b   :  { %p397_p11 = scmp.ne.s32.totalorder %s19_s8, %s396_s1  ;;  %p402_p13 = scmp.lt.s32.totalorder %s396_s1, %s396_s1 }
  0x1d   :  { %p403_p0 = por %p402_p13, %p401_p12 }
  0x1f   :  { %p404_p1 = pnand %p403_p0, %p397_p11 }
  0x21   :  { %407 = shalt.err (!%p404_p1)
}
  0x22   :  { %21 = dma.hbm_to_vmem [thread:$0]  %s526_s0, 128, %s19_s8, [#allocation3]  }
  0x23   :  { %s408_s22 = scalar_lea.hbm %s529_s3, 4096 }
  0x24   :  { %p409_p2 = scmp.ne.s32.totalorder %s529_s3, %s408_s22  ;;  %p412_p3 = scmp.lt.u32.totalorder %s408_s22, %s529_s3 }
  0x26   :  { %p414_p4 = pnand %p412_p3, %p409_p2 }
  0x28   :  { %417 = shalt.err (!%p414_p4)
}
  0x29   :  { %s418_s27 = scalar_lea.vmem %s42_s10, 4096  ;;  %p423_p6 = scmp.lt.s32.totalorder %s42_s10, %s42_s10 }
  0x2a   :  { %p419_p5 = scmp.ne.s32.totalorder %s42_s10, %s418_s27  ;;  %p424_p7 = scmp.lt.s32.totalorder %s418_s27, %s418_s27 }
  0x2c   :  { %p425_p8 = por %p424_p7, %p423_p6 }
  0x2e   :  { %p426_p9 = pnand %p425_p8, %p419_p5 }
  0x30   :  { %429 = shalt.err (!%p426_p9)
}
  0x31   :  { %s439_s0 = smov 128   ;;  %s440_s28 = smov 8  }
  0x32   :  { %47 = dma.hbm_to_vmem [thread:$0]  %s529_s3, 4096, %s42_s10, [#allocation5], %s439_s0, %s439_s0, %s440_s28  }
  0x33   :  { %430 = dma.done.wait [#allocation3], 128  }
  0x34   :  { %431 = vsyncadd [#allocation3], 4294967168 }
  0x35   :  { %432 = dma.done.wait [#allocation5], 4608  }
  0x36   :  { %433 = vsyncadd [#allocation5], 4294962688  ;;  %v441_v0 = vmov 0.0   ;;  %vm80_vm0 = vcmask 1045504   ;;  %vm442_vm1 = vmmov 1   ;;  %v61_v2 = vld [vmem:[#allocation4 + $0x8] sm:$0xff]  ;;  %v66_v57 = vlaneseq }
  0x37   :  { %151 = vmatprep.mubr.f32.mxu0 %v441_v0  ;;  %vm509_vm2 = vmpackc.low %vm80_vm0, %vm442_vm1  ;;  %v63_v3 = vld [vmem:[#allocation4 + $0x18] sm:$0x3f]  ;;  %v60_v4 = vld [vmem:[#allocation4] sm:$0xff]  ;;  %vm76_vm3 = vcmask 113664   ;;  %vm270_vm4 = vcmask 15360  }
  0x38   :  { %v317_v5 = vpack.c.bf16 %v63_v3, %v61_v2  ;;  %v62_v6 = vld [vmem:[#allocation4 + $0x10] sm:$0x3f]  ;;  %v176_v7 = vld [vmem:[#allocation6 + $0x80] sm:$0xff]  ;;  %v59_v9 = vld [vmem:[#allocation2] sm:$0xff]  ;;  %v67_v58 = vshrl.u32 %v66_v57, 7 }
  0x39   :  { %v320_v8 = vpack.c.bf16 %v62_v6, %v60_v4  ;;  %v177_v10 = vld [vmem:[#allocation6 + $0x88] sm:$0xff]  ;;  %v160_v11 = vld [vmem:[#allocation6] sm:$0xff]  ;;  %v178_v15 = vld [vmem:[#allocation6 + $0x90] sm:$0xff] }
  0x3a   :  { %v161_v12 = vld [vmem:[#allocation6 + $0x8] sm:$0xff]  ;;  %319 = vmatprep.subr.msk.bf16.mxu0 %vm509_vm2, %v317_v5  ;;  %v323_v13 = vpack.c.bf16 %v177_v10, %v176_v7  ;;  %v179_v16 = vld [vmem:[#allocation6 + $0x98] sm:$0xff]  ;;  %v162_v17 = vld [vmem:[#allocation6 + $0x10] sm:$0xff]  ;;  %v68_v59 = vsub.s32 0, %v67_v58  ;;  %v72_v61 = vsub.s32 1, %v67_v58 }
  0x3b   :  { %v325_v14 = vpack.c.bf16 %v161_v12, %v160_v11  ;;  %322 = vmatpush1.bf16.msk.msra.mxu0 %vm509_vm2, %v320_v8  ;;  %v327_v18 = vpack.c.bf16 %v179_v16, %v178_v15  ;;  %v163_v19 = vld [vmem:[#allocation6 + $0x18] sm:$0xff]  ;;  %v180_v20 = vld [vmem:[#allocation6 + $0xa0] sm:$0xff]  ;;  %v181_v21 = vld [vmem:[#allocation6 + $0xa8] sm:$0xff] }
  0x3c   :  { %324 = vmatprep.subr.bf16.mxu1 %v323_v13  ;;  %v329_v22 = vpack.c.bf16 %v163_v19, %v162_v17  ;;  %v331_v23 = vpack.c.bf16 %v181_v21, %v180_v20  ;;  %v164_v24 = vld [vmem:[#allocation6 + $0x20] sm:$0xff]  ;;  %v165_v25 = vld [vmem:[#allocation6 + $0x28] sm:$0xff]  ;;  %v182_v26 = vld [vmem:[#allocation6 + $0xb0] sm:$0xff] }
  0x3d   :  { %326 = vmatpush3.bf16.msra.mxu1 %v325_v14  ;;  %v183_v27 = vld [vmem:[#allocation6 + $0xb8] sm:$0xff]  ;;  %v333_v28 = vpack.c.bf16 %v165_v25, %v164_v24  ;;  %v166_v30 = vld [vmem:[#allocation6 + $0x30] sm:$0xff]  ;;  %v184_v32 = vld [vmem:[#allocation6 + $0xc0] sm:$0xff] }
  0x3e   :  { %280 = vmatmul.mubr.msk.f32.vlgmr.msra.gmra.mrb[0].mxu0 %vm76_vm3, %v59_v9  ;;  %328 = vmatprep.subr.bf16.mxu1 %v327_v18  ;;  %v335_v29 = vpack.c.bf16 %v183_v27, %v182_v26  ;;  %v167_v31 = vld [vmem:[#allocation6 + $0x38] sm:$0xff]  ;;  %v185_v33 = vld [vmem:[#allocation6 + $0xc8] sm:$0xff]  ;;  %v168_v36 = vld [vmem:[#allocation6 + $0x40] sm:$0xff] }
  0x3f   :  { %v337_v34 = vpack.c.bf16 %v167_v31, %v166_v30  ;;  %v339_v35 = vpack.c.bf16 %v185_v33, %v184_v32  ;;  %v169_v37 = vld [vmem:[#allocation6 + $0x48] sm:$0xff]  ;;  %v186_v38 = vld [vmem:[#allocation6 + $0xd0] sm:$0xff]  ;;  %v187_v39 = vld [vmem:[#allocation6 + $0xd8] sm:$0xff] }
  0x40   :  { %v341_v40 = vpack.c.bf16 %v169_v37, %v168_v36  ;;  %v343_v41 = vpack.c.bf16 %v187_v39, %v186_v38  ;;  %v170_v42 = vld [vmem:[#allocation6 + $0x50] sm:$0xff]  ;;  %v171_v43 = vld [vmem:[#allocation6 + $0x58] sm:$0xff]  ;;  %v188_v44 = vld [vmem:[#allocation6 + $0xe0] sm:$0xff] }
  0x41   :  { %330 = vmatpush3.bf16.msra.mxu1 %v329_v22  ;;  %v189_v45 = vld [vmem:[#allocation6 + $0xe8] sm:$0xff]  ;;  %v345_v46 = vpack.c.bf16 %v171_v43, %v170_v42  ;;  %v172_v48 = vld [vmem:[#allocation6 + $0x60] sm:$0xff]  ;;  %v190_v51 = vld [vmem:[#allocation6 + $0xf0] sm:$0xff] }
  0x42   :  { %332 = vmatprep.subr.bf16.mxu1 %v331_v23  ;;  %v347_v47 = vpack.c.bf16 %v189_v45, %v188_v44  ;;  %v173_v49 = vld [vmem:[#allocation6 + $0x68] sm:$0xff]  ;;  %v191_v52 = vld [vmem:[#allocation6 + $0xf8] sm:$0xff]  ;;  %v174_v54 = vld [vmem:[#allocation6 + $0x70] sm:$0xff] }
  0x43   :  { %v349_v50 = vpack.c.bf16 %v173_v49, %v172_v48  ;;  %v351_v53 = vpack.c.bf16 %v191_v52, %v190_v51  ;;  %v175_v55 = vld [vmem:[#allocation6 + $0x78] sm:$0xff] }
  0x44   :  { %v353_v56 = vpack.c.bf16 %v175_v55, %v174_v54  ;;  %v64_v60 = vld [vmem:[%s528_s2] sm:$0x3] }
  0x45   :  { %334 = vmatpush3.bf16.msra.mxu1 %v333_v28  ;;  %v69_v62 = vrot.slane %v64_v60, %v68_v59  ;;  %v73_v63 = vrot.slane %v64_v60, %v72_v61  ;;  %v281_v8 = vld [vmem:[%s530_s4] ss:$0 sm:$0xff] }
  0x46   :  { %336 = vmatprep.subr.bf16.mxu1 %v335_v29 }
  0x49   :  { %338 = vmatpush3.bf16.msra.mxu1 %v337_v34 }
  0x4a   :  { %340 = vmatprep.subr.bf16.mxu1 %v339_v35 }
  0x4d   :  { %342 = vmatpush3.bf16.msra.mxu1 %v341_v40 }
  0x4e   :  { %344 = vmatprep.subr.bf16.mxu1 %v343_v41 }
  0x51   :  { %346 = vmatpush3.bf16.msra.mxu1 %v345_v46 }
  0x52   :  { %348 = vmatprep.subr.bf16.mxu1 %v347_v47 }
  0x55   :  { %350 = vmatpush3.bf16.msra.mxu1 %v349_v50 }
  0x56   :  { %352 = vmatprep.subr.bf16.mxu1 %v351_v53 }
  0x59   :  { %354 = vmatpush3.bf16.msra.mxu1 %v353_v56 }
 0x111   :  { %v153_v0 = vpop.f32.mrb[0].mxu0 }
 0x112   :  { %v154_v1 = vadd.f32 %v153_v0, %v69_v62  ;;  %v155_v2 = vpop.f32.mrb[1].mxu0 }
 0x113   :  { %v156_v3 = vadd.f32 %v155_v2, %v73_v63 }
 0x114   :  { %v158_v5 = vmax.f32 %v154_v1, 0.0 }
 0x115   :  { %v159_v4 = vmax.f32 %v156_v3, 0.0 }
 0x117   :  { %256 = vmatprep.mubr.f32.mxu1 %v159_v4 }
 0x118   :  { %257 = vmatmul.mubr.f32.vlgmr.msra.gmra.mrb[0].mxu1 %v158_v5 }
 0x1eb   :  { %v314_v6 = vpop.f32.mrb[0].mxu1 }
 0x1ec   :  { %v315_v7 = vpop.f32.mrb[1].mxu1 }
 0x1ed   :  { %v316_v9 = vadd.f32 %v315_v7, %v314_v6 }
 0x1ef   :  { %v269_v10 = vadd.f32 %v316_v9, %v281_v8 }
 0x1f1   :  { %271 = vst.msk [vmem:[%s531_s5] sm:$0xff] %vm270_vm4, %v269_v10 }
 0x1f2   :  { %276 = vsyncpa [#allocation3], 1 }
 0x1f3   :  { %277 = vsyncpa [#allocation5], 1 }

</bundles_post_ra>
